<compile_context>
chip_gen: v7x
topology: tpu7x:2x2x1
jax: 0.10.0
libtpu: 0.0.40
codegen_flags: <defaults>
</compile_context>

<pallas_src>
import functools

import jax
import jax.numpy as jnp
from jax import lax
from jax.experimental import pallas as pl
from jax.experimental.pallas import tpu as pltpu

_SUBLANE = 8
_LANE = 128
# Double-buffered working-set budget for 2 inputs + 1 output.  24 MiB fits the
# v6e/v7x 32 MiB scoped-VMEM default and the explicit 32 MiB limit we set for
# v5e (128 MiB physical) / v7x (64 MiB physical).
_VMEM_BUDGET_BYTES = 24 * 1024 * 1024
_VMEM_LIMIT_BYTES = 32 * 1024 * 1024


def _round_up(x, m):
    return ((x + m - 1) // m) * m


def _focal_loss_kernel(logits_ref, targets_ref, out_ref, *, alpha, gamma):
    x = logits_ref[...].astype(jnp.float32)
    t = targets_ref[...].astype(jnp.float32)

    # Shared exp(-|x|) for both sigmoid(x) and the stable BCE log term.
    e = jnp.exp(-jnp.abs(x))
    inv = pl.reciprocal(1.0 + e)            # exact reciprocal (not approx: need 1e-5)
    # sigmoid(x): x >= 0 -> 1/(1+e);  x < 0 -> e/(1+e)
    p = jnp.where(x >= 0.0, inv, e * inv)

    # Numerically-stable BCE with logits: max(x,0) - x*t + log(1 + exp(-|x|))
    ce = jnp.maximum(x, 0.0) - x * t + jnp.log1p(e)

    p_t = p * t + (1.0 - p) * (1.0 - t)
    one_minus_pt = 1.0 - p_t

    # Modulating factor (1 - p_t)**gamma: avoid exp/log pow for integer gamma.
    if float(gamma) == 2.0:
        mod = one_minus_pt * one_minus_pt
    elif float(gamma) == int(gamma) and gamma >= 0:
        mod = lax.integer_pow(one_minus_pt, int(gamma))
    else:
        mod = jnp.power(jnp.maximum(one_minus_pt, 0.0), gamma)

    loss = ce * mod

    if alpha >= 0:
        alpha_t = alpha * t + (1.0 - alpha) * (1.0 - t)
        loss = alpha_t * loss

    out_ref[...] = loss.astype(out_ref.dtype)


def _focal_loss_elementwise(x, t, alpha, gamma):
    """Pure-JAX elementwise focal loss (used for the <lane-width tail and as reference)."""
    x = x.astype(jnp.float32)
    t = t.astype(jnp.float32)
    p = jax.nn.sigmoid(x)
    ce = jnp.maximum(x, 0.0) - x * t + jnp.log1p(jnp.exp(-jnp.abs(x)))
    p_t = p * t + (1.0 - p) * (1.0 - t)
    loss = ce * (1.0 - p_t) ** gamma
    if alpha >= 0:
        alpha_t = alpha * t + (1.0 - alpha) * (1.0 - t)
        loss = alpha_t * loss
    return loss


def _run_kernel(x2d, t2d, *, alpha, gamma, out_dtype):
    rows, lane_w = x2d.shape

    # Budget-derived block size: 2 inputs + 1 output, double-buffered.
    bytes_per_row = lane_w * (
        x2d.dtype.itemsize + t2d.dtype.itemsize + jnp.dtype(out_dtype).itemsize
    ) * 2
    max_block_rows = max(_SUBLANE, (_VMEM_BUDGET_BYTES // bytes_per_row) // _SUBLANE * _SUBLANE)
    # Largest tile (capped) regardless of input size.  If rows < block_rows the
    # single (partial) edge block is masked by Pallas — correct, just padded work.
    block_rows = min(_round_up(rows, _SUBLANE), max_block_rows)
    grid = (pl.cdiv(rows, block_rows),)

    n = rows * lane_w
    in_bytes = n * (x2d.dtype.itemsize + t2d.dtype.itemsize)
    out_bytes = n * jnp.dtype(out_dtype).itemsize

    kernel = functools.partial(_focal_loss_kernel, alpha=float(alpha), gamma=float(gamma))

    return pl.pallas_call(
        kernel,
        out_shape=jax.ShapeDtypeStruct((rows, lane_w), out_dtype),
        grid=grid,
        in_specs=[
            pl.BlockSpec((block_rows, lane_w), lambda i: (i, 0)),
            pl.BlockSpec((block_rows, lane_w), lambda i: (i, 0)),
        ],
        out_specs=pl.BlockSpec((block_rows, lane_w), lambda i: (i, 0)),
        compiler_params=pltpu.CompilerParams(
            # "parallel" shards the streaming axis across TensorCores on
            # megacore parts; kept (vs CORE_PARALLEL) for single-core safety.
            dimension_semantics=("parallel",),
            vmem_limit_bytes=_VMEM_LIMIT_BYTES,
        ),
        cost_estimate=pl.CostEstimate(
            flops=15 * n,
            transcendentals=2 * n,
            bytes_accessed=in_bytes + out_bytes,
        ),
    )(x2d, t2d)


def focal_loss(logits, targets, *, alpha=0.25, gamma=2.0, reduction="none",
               out_dtype=jnp.float32):
    """FocalLoss forward: elementwise sigmoid focal loss via a Pallas TPU kernel."""
    orig_shape = logits.shape
    n = logits.size

    x = logits.reshape(-1)
    t = targets.reshape(-1)

    # Lane-dense layout: prefer a wider last dim when numel allows it
    # (longer unmasked vld/vst runs; block byte size is held constant).
    lane_w = _LANE
    for w in (512, 256):
        if n % w == 0:
            lane_w = w
            break

    rem = n % lane_w            # nonzero only when n is not a multiple of 128
    main_n = n - rem

    parts = []
    if main_n:
        rows = main_n // lane_w
        # Prefix slice + reshape: a bitcast when rem == 0 (the common case) —
        # no pad copy, no output [:n] slice copy.
        xm = x[:main_n].reshape(rows, lane_w)
        tm = t[:main_n].reshape(rows, lane_w)
        out2d = _run_kernel(xm, tm, alpha=alpha, gamma=gamma, out_dtype=out_dtype)
        parts.append(out2d.reshape(-1))
    if rem:
        # Tiny (<128 element) tail computed in plain JAX instead of padding the
        # whole array through HBM.
        tail = _focal_loss_elementwise(x[main_n:], t[main_n:], alpha, gamma)
        parts.append(tail.astype(out_dtype))

    loss_flat = parts[0] if len(parts) == 1 else jnp.concatenate(parts)
    loss = loss_flat.reshape(orig_shape)

    if reduction == "none":
        return loss
    elif reduction == "mean":
        return jnp.mean(loss)
    elif reduction == "sum":
        return jnp.sum(loss)
    else:
        raise ValueError(f"Invalid reduction: {reduction}")


if __name__ == "__main__":
    # FocalLoss has no learned parameters; alpha/gamma are fixed hyperparameters.
    key = jax.random.PRNGKey(0)
    k_logits, k_targets, k_logits2, k_targets2 = jax.random.split(key, 4)

    # Small NCHW-style detection-head shape: batch=2, classes=4, spatial=16x16.
    shape = (2, 4, 16, 16)
    logits = jax.random.normal(k_logits, shape, dtype=jnp.float32) * 2.0
    targets = jax.random.bernoulli(k_targets, p=0.3, shape=shape).astype(jnp.float32)

    loss = focal_loss(logits, targets, alpha=0.25, gamma=2.0, reduction="none")
    loss = jax.block_until_ready(loss)

    ref = _focal_loss_elementwise(logits, targets, 0.25, 2.0)
    assert loss.shape == shape and loss.dtype == jnp.float32
    assert jnp.allclose(loss, ref, atol=1e-5, rtol=1e-5), "mismatch vs reference"

    # Odd (non-multiple-of-128) size: exercises the kernel + pure-JAX tail path.
    shape2 = (2, 131)
    logits2 = jax.random.normal(k_logits2, shape2, dtype=jnp.float32) * 2.0
    targets2 = jax.random.bernoulli(k_targets2, p=0.3, shape=shape2).astype(jnp.float32)
    loss2 = jax.block_until_ready(focal_loss(logits2, targets2))
    ref2 = _focal_loss_elementwise(logits2, targets2, 0.25, 2.0)
    assert loss2.shape == shape2
    assert jnp.allclose(loss2, ref2, atol=1e-5, rtol=1e-5), "mismatch vs reference (tail)"

    print("KERNEL_OK")
</pallas_src>

<mosaic_0001>
module attributes {stable_mosaic.version = 11 : i64} {
  func.func @_focal_loss_kernel(%arg0: i32, %arg1: memref<8x512xf32, #tpu.memory_space<vmem>>, %arg2: memref<8x512xf32, #tpu.memory_space<vmem>>, %arg3: memref<8x512xf32, #tpu.memory_space<vmem>>) attributes {dimension_semantics = [#tpu.dimension_semantics<parallel>], iteration_bounds = array<i64: 1>, scalar_prefetch = 0 : i64, scratch_operands = 0 : i64, tpu.core_type = #tpu.core_type<tc>, window_params = [{transform_indices = @transform_0, window_bounds = array<i64: 8, 512>}, {transform_indices = @transform_1, window_bounds = array<i64: 8, 512>}, {transform_indices = @transform_2, window_bounds = array<i64: 8, 512>}]} {
    %c0 = arith.constant 0 : index
    %c0_0 = arith.constant 0 : index
    %0 = vector.load %arg1[%c0, %c0_0] : memref<8x512xf32, #tpu.memory_space<vmem>>, vector<8x512xf32>
    %c0_1 = arith.constant 0 : index
    %c0_2 = arith.constant 0 : index
    %1 = vector.load %arg2[%c0_1, %c0_2] : memref<8x512xf32, #tpu.memory_space<vmem>>, vector<8x512xf32>
    %2 = math.absf %0 : vector<8x512xf32>
    %cst = arith.constant 0.000000e+00 : f32
    %3 = vector.broadcast %cst : f32 to vector<8x512xf32>
    %4 = arith.subf %3, %2 : vector<8x512xf32>
    %5 = math.exp %4 : vector<8x512xf32>
    %cst_3 = arith.constant 1.000000e+00 : f32
    %6 = vector.broadcast %cst_3 : f32 to vector<8x512xf32>
    %7 = arith.addf %6, %5 : vector<8x512xf32>
    %8 = tpu.reciprocal %7 : vector<8x512xf32> -> vector<8x512xf32>
    %cst_4 = arith.constant 0.000000e+00 : f32
    %9 = vector.broadcast %cst_4 : f32 to vector<8x512xf32>
    %10 = arith.cmpf oge, %0, %9 : vector<8x512xf32>
    %11 = arith.mulf %5, %8 : vector<8x512xf32>
    %12 = arith.select %10, %8, %11 : vector<8x512xi1>, vector<8x512xf32>
    %cst_5 = arith.constant 0.000000e+00 : f32
    %13 = vector.broadcast %cst_5 : f32 to vector<8x512xf32>
    %14 = arith.maximumf %0, %13 : vector<8x512xf32>
    %15 = arith.mulf %0, %1 : vector<8x512xf32>
    %16 = arith.subf %14, %15 : vector<8x512xf32>
    %17 = math.log1p %5 : vector<8x512xf32>
    %18 = arith.addf %16, %17 : vector<8x512xf32>
    %19 = arith.mulf %12, %1 : vector<8x512xf32>
    %cst_6 = arith.constant 1.000000e+00 : f32
    %20 = vector.broadcast %cst_6 : f32 to vector<8x512xf32>
    %21 = arith.subf %20, %12 : vector<8x512xf32>
    %cst_7 = arith.constant 1.000000e+00 : f32
    %22 = vector.broadcast %cst_7 : f32 to vector<8x512xf32>
    %23 = arith.subf %22, %1 : vector<8x512xf32>
    %24 = arith.mulf %21, %23 : vector<8x512xf32>
    %25 = arith.addf %19, %24 : vector<8x512xf32>
    %cst_8 = arith.constant 1.000000e+00 : f32
    %26 = vector.broadcast %cst_8 : f32 to vector<8x512xf32>
    %27 = arith.subf %26, %25 : vector<8x512xf32>
    %28 = arith.mulf %27, %27 : vector<8x512xf32>
    %29 = arith.mulf %18, %28 : vector<8x512xf32>
    %cst_9 = arith.constant 2.500000e-01 : f32
    %30 = vector.broadcast %cst_9 : f32 to vector<8x512xf32>
    %31 = arith.mulf %30, %1 : vector<8x512xf32>
    %cst_10 = arith.constant 1.000000e+00 : f32
    %32 = vector.broadcast %cst_10 : f32 to vector<8x512xf32>
    %33 = arith.subf %32, %1 : vector<8x512xf32>
    %cst_11 = arith.constant 7.500000e-01 : f32
    %34 = vector.broadcast %cst_11 : f32 to vector<8x512xf32>
    %35 = arith.mulf %34, %33 : vector<8x512xf32>
    %36 = arith.addf %31, %35 : vector<8x512xf32>
    %37 = arith.mulf %36, %29 : vector<8x512xf32>
    %c0_12 = arith.constant 0 : index
    %c0_13 = arith.constant 0 : index
    %38 = vector.load %arg3[%c0_12, %c0_13] : memref<8x512xf32, #tpu.memory_space<vmem>>, vector<8x512xf32>
    tpu.vector_store %arg3[%c0_12, %c0_13], %37 {strides = array<i32>} : memref<8x512xf32, #tpu.memory_space<vmem>>, vector<8x512xf32>,
    return
  }
  func.func @transform_0(%arg0: i32) -> (i32, i32) {
    %c0_i32 = arith.constant 0 : i32
    %c0_i32_0 = arith.constant 0 : i32
    return %arg0, %c0_i32 : i32, i32
  }
  func.func @transform_1(%arg0: i32) -> (i32, i32) {
    %c0_i32 = arith.constant 0 : i32
    %c0_i32_0 = arith.constant 0 : i32
    return %arg0, %c0_i32 : i32, i32
  }
  func.func @transform_2(%arg0: i32) -> (i32, i32) {
    %c0_i32 = arith.constant 0 : i32
    %c0_i32_0 = arith.constant 0 : i32
    return %arg0, %c0_i32 : i32, i32
  }
}

</mosaic_0001>

<bundles_post_ra>
// kernel: tpu_custom_call.1
= control target key start
LH: loop header
LB: loop body
LE: loop exit
PB: predicated region body
PF: predicated region fallthrough
CT: control target
= control target key end

     0   :  { %7 = vsyncpa [#allocation3], 0  ;;  %s491_s0 = inlined_call_operand.hbm [shape: f32[4,512], index: 0, kind: input, shape index: {}]   ;;  %s492_s1 = inlined_call_operand.hbm [shape: f32[4,512], index: 1, kind: input, shape index: {}]   ;;  %s493_s2 = inlined_call_operand.hbm [shape: f32[4,512], index: 2, kind: output, shape index: {}]  }
   0x1   :  { %8 = vsyncpa [#allocation6], 0 }
   0x2   :  { %9 = vsyncpa [#allocation4], 0 }
   0x3   :  { %14 = vsyncadd [#allocation3], 256  ;;  %s307_s9 = smov [#allocation2]   ;;  %s235_s13 = scalar_lea.hbm %s491_s0, 256 }
   0x4   :  { %s15_s10 = sshll.u32 %s307_s9, 4  ;;  %p236_p0 = scmp.ne.s32.totalorder %s491_s0, %s235_s13  ;;  %s16_s10 = int_to_ptr.vmem [resolvable:$true] %s15_s10 }
   0x5   :  { %p239_p1 = scmp.lt.u32.totalorder %s235_s13, %s491_s0 }
   0x7   :  { %p241_p2 = pnand %p239_p1, %p236_p0 }
   0x9   :  { %244 = shalt.err (!%p241_p2)
}
   0xa   :  { %s245_s18 = scalar_lea.vmem %s16_s10, 256  ;;  %s249_s19 = scalar_lea.vmem %s16_s10, 512 }
   0xb   :  { %p246_p3 = scmp.ne.s32.totalorder %s16_s10, %s245_s18  ;;  %p250_p4 = scmp.lt.s32.totalorder %s16_s10, %s16_s10 }
   0xc   :  { %p251_p5 = scmp.lt.s32.totalorder %s249_s19, %s245_s18 }
   0xe   :  { %p252_p6 = por %p251_p5, %p250_p4 }
  0x10   :  { %p253_p7 = pnand %p252_p6, %p246_p3 }
  0x12   :  { %256 = shalt.err (!%p253_p7)
}
  0x13   :  { %s308_s20 = smov 256   ;;  %s309_s21 = smov 16  }
  0x14   :  { %21 = dma.hbm_to_vmem [thread:$0]  %s491_s0, 256, %s16_s10, [#allocation3], %s308_s20, %s308_s20, %s309_s21  }
  0x15   :  { %26 = vsyncadd [#allocation6], 256  ;;  %s310_s24 = smov [#allocation5]   ;;  %s257_s28 = scalar_lea.hbm %s492_s1, 256 }
  0x16   :  { %s27_s25 = sshll.u32 %s310_s24, 4  ;;  %p258_p8 = scmp.ne.s32.totalorder %s492_s1, %s257_s28  ;;  %s28_s25 = int_to_ptr.vmem [resolvable:$true] %s27_s25 }
  0x17   :  { %p261_p9 = scmp.lt.u32.totalorder %s257_s28, %s492_s1 }
  0x19   :  { %p263_p10 = pnand %p261_p9, %p258_p8 }
  0x1b   :  { %266 = shalt.err (!%p263_p10)
}
  0x1c   :  { %s267_s5 = scalar_lea.vmem %s28_s25, 256  ;;  %s271_s0 = scalar_lea.vmem %s28_s25, 512 }
  0x1d   :  { %p268_p11 = scmp.ne.s32.totalorder %s28_s25, %s267_s5  ;;  %p272_p12 = scmp.lt.s32.totalorder %s28_s25, %s28_s25 }
  0x1e   :  { %p273_p13 = scmp.lt.s32.totalorder %s271_s0, %s267_s5 }
  0x20   :  { %p274_p0 = por %p273_p13, %p272_p12 }
  0x22   :  { %p275_p1 = pnand %p274_p0, %p268_p11 }
  0x24   :  { %278 = shalt.err (!%p275_p1)
}
  0x25   :  { %33 = dma.hbm_to_vmem [thread:$0]  %s492_s1, 256, %s28_s25, [#allocation6], %s308_s20, %s308_s20, %s309_s21  }
  0x26   :  { %301 = dma.done.wait [#allocation3], 512  }
  0x27   :  { %302 = vsyncadd [#allocation3], 4294966784 }
  0x28   :  { %303 = dma.done.wait [#allocation6], 512  }
  0x29   :  { %304 = vsyncadd [#allocation6], 4294966784  ;;  %v357_v0 = vld [vmem:[#allocation2] sm:$0xff]  ;;  %v359_v1 = vld [vmem:[#allocation2 + $0x8] sm:$0xff] }
  0x2a   :  { %v48_v2 = vand.u32 2147483647, %v357_v0  ;;  %v49_v3 = vand.u32 2147483647, %v359_v1  ;;  %v363_v4 = vld [vmem:[#allocation2 + $0x10] sm:$0xff]  ;;  %v366_v9 = vld [vmem:[#allocation2 + $0x18] sm:$0xff] }
  0x2b   :  { %v50_v8 = vand.u32 2147483647, %v363_v4  ;;  %v51_v12 = vand.u32 2147483647, %v366_v9  ;;  %v372_v20 = vld [vmem:[#allocation5] sm:$0xff]  ;;  %vm72_vm0 = vcmp.ge.f32.partialorder %v357_v0, 0.0 }
  0x2c   :  { %v52_v5 = vsub.f32 0.0, %v48_v2  ;;  %v53_v6 = vsub.f32 0.0, %v49_v3  ;;  %v84_v22 = vmax.f32 %v357_v0, 0.0  ;;  %v88_v23 = vmul.f32 %v372_v20, %v357_v0  ;;  %v380_v24 = vld [vmem:[#allocation5 + $0x8] sm:$0xff]  ;;  %v392_v34 = vld [vmem:[#allocation5 + $0x10] sm:$0xff] }
  0x2d   :  { %v54_v11 = vsub.f32 0.0, %v50_v8  ;;  %v55_v14 = vsub.f32 0.0, %v51_v12  ;;  %v144_v26 = vsub.f32 1.0, %v372_v20  ;;  %v85_v27 = vmax.f32 %v359_v1, 0.0 }
  0x2e   :  { %v56_v7 = vmul.f32 1.442695, %v52_v5  ;;  %v58_v10 = vmul.f32 1.442695, %v53_v6  ;;  %v89_v28 = vmul.f32 %v380_v24, %v359_v1  ;;  %v168_v31 = vmul.f32 0.25, %v372_v20 }
  0x2f   :  { %v60_v13 = vmul.f32 1.442695, %v54_v11  ;;  %v62_v15 = vmul.f32 1.442695, %v55_v14  ;;  %vm73_vm1 = vcmp.ge.f32.partialorder %v359_v1, 0.0  ;;  %v172_v32 = vmul.f32 0.75, %v144_v26 }
  0x30   :  { %211 = vpow2.f32 %v56_v7  ;;  %v395_v36 = vsub.f32 %v84_v22, %v88_v23  ;;  %v145_v37 = vsub.f32 1.0, %v380_v24  ;;  %v86_v38 = vmax.f32 %v363_v4, 0.0 }
  0x31   :  { %213 = vpow2.f32 %v58_v10  ;;  %v90_v39 = vmul.f32 %v392_v34, %v363_v4  ;;  %v401_v40 = vsub.f32 %v85_v27, %v89_v28  ;;  %v404_v41 = vmul.f32 0.25, %v380_v24 }
  0x32   :  { %215 = vpow2.f32 %v60_v13  ;;  %vm74_vm2 = vcmp.ge.f32.partialorder %v363_v4, 0.0  ;;  %v146_v45 = vsub.f32 1.0, %v392_v34  ;;  %v409_v46 = vadd.f32 %v172_v32, %v168_v31 }
  0x33   :  { %217 = vpow2.f32 %v62_v15  ;;  %v411_v48 = vmul.f32 0.75, %v145_v37  ;;  %v414_v51 = vsub.f32 %v86_v38, %v90_v39  ;;  %v417_v52 = vmul.f32 0.25, %v392_v34 }
  0x34   :  { %v419_v53 = vmul.f32 0.75, %v146_v45  ;;  %vm75_vm3 = vcmp.ge.f32.partialorder %v366_v9, 0.0  ;;  %v87_v61 = vmax.f32 %v366_v9, 0.0 }
  0x3a   :  { %v212_v16 = vpop.eup %211 }
  0x3b   :  { %v369_v17 = vpop.eup %213  ;;  %v64_v18 = vadd.f32 1.0, %v212_v16  ;;  %v99_v30 = vmul.f32 -0.5, %v212_v16  ;;  %v102_v44 = vand.u32 2147483647, %v212_v16 }
  0x3c   :  { %v65_v19 = vadd.f32 1.0, %v369_v17  ;;  %v374_v21 = vpop.eup %215  ;;  %v108_v33 = vmul.f32 -0.5, %v369_v17  ;;  %v111_v50 = vand.u32 2147483647, %v369_v17 }
  0x3d   :  { %219 = vrcp.f32 %v64_v18  ;;  %v66_v25 = vadd.f32 1.0, %v374_v21  ;;  %v387_v29 = vpop.eup %217  ;;  %v117_v42 = vmul.f32 -0.5, %v374_v21  ;;  %v100_v43 = vadd.f32 1.0, %v99_v30 }
  0x3e   :  { %221 = vlog2.f32 %v64_v18  ;;  %v67_v35 = vadd.f32 1.0, %v387_v29  ;;  %v109_v47 = vadd.f32 1.0, %v108_v33  ;;  %v120_v57 = vand.u32 2147483647, %v374_v21 }
  0x3f   :  { %223 = vrcp.f32 %v65_v19  ;;  %v118_v56 = vadd.f32 1.0, %v117_v42  ;;  %v101_v59 = vmul.f32 %v212_v16, %v100_v43  ;;  %vm423_vm4 = vcmp.lt.f32.partialorder %v102_v44, 0.0004427343 }
  0x40   :  { %225 = vlog2.f32 %v65_v19  ;;  %v126_v62 = vmul.f32 -0.5, %v387_v29  ;;  %v110_v6 = vmul.f32 %v369_v17, %v109_v47  ;;  %vm434_vm5 = vcmp.lt.f32.partialorder %v111_v50, 0.0004427343 }
  0x41   :  { %227 = vrcp.f32 %v66_v25  ;;  %v119_v15 = vmul.f32 %v374_v21, %v118_v56  ;;  %vm442_vm6 = vcmp.lt.f32.partialorder %v120_v57, 0.0004427343 }
  0x42   :  { %229 = vlog2.f32 %v66_v25  ;;  %v127_v22 = vadd.f32 1.0, %v126_v62 }
  0x43   :  { %231 = vrcp.f32 %v67_v35 }
  0x44   :  { %233 = vlog2.f32 %v67_v35  ;;  %v129_v35 = vand.u32 2147483647, %v387_v29  ;;  %v128_v47 = vmul.f32 %v387_v29, %v127_v22 }
  0x46   :  { %vm466_vm7 = vcmp.lt.f32.partialorder %v129_v35, 0.0004427343 }
  0x47   :  { %v220_v49 = vpop.eup %219 }
  0x48   :  { %v222_v54 = vpop.eup %221  ;;  %v76_v55 = vmul.f32 %v220_v49, %v212_v16 }
  0x49   :  { %v224_v58 = vpop.eup %223  ;;  %v98_v3 = vmul.f32 0.6931472, %v222_v54 }
  0x4a   :  { %v226_v63 = vpop.eup %225  ;;  %v80_v2 = vsel %vm72_vm0, %v220_v49, %v76_v55  ;;  %v77_v5 = vmul.f32 %v224_v58, %v369_v17 }
  0x4b   :  { %v228_v7 = vpop.eup %227  ;;  %v136_v8 = vmul.f32 %v80_v2, %v372_v20  ;;  %v140_v10 = vsub.f32 1.0, %v80_v2  ;;  %v107_v11 = vmul.f32 0.6931472, %v226_v63  ;;  %v47_v20 = vld [vmem:[#allocation5 + $0x18] sm:$0xff]  ;;  %v104_v25 = vsel %vm423_vm4, %v101_v59, %v98_v3 }
  0x4c   :  { %v230_v13 = vpop.eup %229  ;;  %v81_v14 = vsel %vm73_vm1, %v224_v58, %v77_v5  ;;  %v78_v0 = vmul.f32 %v228_v7, %v374_v21  ;;  %v91_v33 = vmul.f32 %v47_v20, %v366_v9  ;;  %v147_v38 = vsub.f32 1.0, %v47_v20 }
  0x4d   :  { %v148_v17 = vmul.f32 %v144_v26, %v140_v10  ;;  %v137_v18 = vmul.f32 %v81_v14, %v380_v24  ;;  %v141_v19 = vsub.f32 1.0, %v81_v14  ;;  %v232_v23 = vpop.eup %231  ;;  %v113_v1 = vsel %vm434_vm5, %v110_v6, %v107_v11 }
  0x4e   :  { %v82_v21 = vsel %vm74_vm2, %v228_v7, %v78_v0  ;;  %v116_v27 = vmul.f32 0.6931472, %v230_v13  ;;  %v234_v24 = vpop.eup %233  ;;  %v79_v32 = vmul.f32 %v232_v23, %v387_v29  ;;  %v132_v39 = vadd.f32 %v104_v25, %v395_v36 }
  0x4f   :  { %v152_v28 = vadd.f32 %v148_v17, %v136_v8  ;;  %v149_v30 = vmul.f32 %v145_v37, %v141_v19  ;;  %v138_v26 = vmul.f32 %v82_v21, %v392_v34  ;;  %v142_v31 = vsub.f32 1.0, %v82_v21 }
  0x50   :  { %v133_v44 = vadd.f32 %v113_v1, %v401_v40  ;;  %v122_v37 = vsel %vm442_vm6, %v119_v15, %v116_v27  ;;  %v83_v34 = vsel %vm75_vm3, %v232_v23, %v79_v32  ;;  %v125_v55 = vmul.f32 0.6931472, %v234_v24 }
  0x51   :  { %v156_v42 = vsub.f32 1.0, %v152_v28  ;;  %v153_v43 = vadd.f32 %v149_v30, %v137_v18  ;;  %v150_v4 = vmul.f32 %v146_v45, %v142_v31  ;;  %v177_v36 = vadd.f32 %v411_v48, %v404_v41 }
  0x52   :  { %v139_v40 = vmul.f32 %v83_v34, %v47_v20  ;;  %v143_v45 = vsub.f32 1.0, %v83_v34  ;;  %v134_v9 = vadd.f32 %v122_v37, %v414_v51  ;;  %v178_v29 = vadd.f32 %v419_v53, %v417_v52 }
  0x53   :  { %v160_v49 = vmul.f32 %v156_v42, %v156_v42  ;;  %v157_v50 = vsub.f32 1.0, %v153_v43  ;;  %v154_v54 = vadd.f32 %v150_v4, %v138_v26  ;;  %v95_v60 = vsub.f32 %v87_v61, %v91_v33 }
  0x54   :  { %v151_v62 = vmul.f32 %v147_v38, %v143_v45  ;;  %v131_v48 = vsel %vm466_vm7, %v128_v47, %v125_v55  ;;  %v171_v5 = vmul.f32 0.25, %v47_v20  ;;  %v175_v6 = vmul.f32 0.75, %v147_v38 }
  0x55   :  { %v164_v57 = vmul.f32 %v160_v49, %v132_v39  ;;  %v161_v58 = vmul.f32 %v157_v50, %v157_v50  ;;  %v158_v59 = vsub.f32 1.0, %v154_v54  ;;  %v135_v51 = vadd.f32 %v131_v48, %v95_v60 }
  0x56   :  { %v155_v3 = vadd.f32 %v151_v62, %v139_v40  ;;  %v179_v53 = vadd.f32 %v175_v6, %v171_v5 }
  0x57   :  { %v180_v63 = vmul.f32 %v409_v46, %v164_v57  ;;  %v165_v2 = vmul.f32 %v161_v58, %v133_v44  ;;  %v162_v41 = vmul.f32 %v158_v59, %v158_v59 }
  0x58   :  { %v159_v10 = vsub.f32 1.0, %v155_v3 }
  0x59   :  { %184 = vst [vmem:[#allocation7] sm:$0xff] %v180_v63  ;;  %v181_v7 = vmul.f32 %v177_v36, %v165_v2  ;;  %v166_v8 = vmul.f32 %v162_v41, %v134_v9 }
  0x5a   :  { %v163_v52 = vmul.f32 %v159_v10, %v159_v10 }
  0x5b   :  { %185 = vst [vmem:[#allocation7 + $0x8] sm:$0xff] %v181_v7  ;;  %v182_v11 = vmul.f32 %v178_v29, %v166_v8 }
  0x5c   :  { %v167_v61 = vmul.f32 %v163_v52, %v135_v51 }
  0x5d   :  { %186 = vst [vmem:[#allocation7 + $0x10] sm:$0xff] %v182_v11 }
  0x5e   :  { %v183_v46 = vmul.f32 %v179_v53, %v167_v61 }
  0x60   :  { %187 = vst [vmem:[#allocation7 + $0x18] sm:$0xff] %v183_v46 }
  0x61   :  { %192 = vsyncadd [#allocation4], 256  ;;  %s311_s1 = smov [#allocation7]  }
  0x62   :  { %s193_s8 = sshll.u32 %s311_s1, 4  ;;  %s194_s8 = int_to_ptr.vmem [resolvable:$true] %s193_s8 }
  0x63   :  { %s279_s9 = scalar_lea.vmem %s194_s8, 256  ;;  %s283_s10 = scalar_lea.vmem %s194_s8, 512 }
  0x64   :  { %p280_p2 = scmp.ne.s32.totalorder %s194_s8, %s279_s9  ;;  %p284_p3 = scmp.lt.s32.totalorder %s194_s8, %s194_s8 }
  0x65   :  { %p285_p4 = scmp.lt.s32.totalorder %s283_s10, %s279_s9 }
  0x67   :  { %p286_p5 = por %p285_p4, %p284_p3 }
  0x69   :  { %p287_p6 = pnand %p286_p5, %p280_p2 }
  0x6b   :  { %290 = shalt.err (!%p287_p6)
}
  0x6c   :  { %s291_s13 = scalar_lea.hbm %s493_s2, 256 }
  0x6d   :  { %p292_p7 = scmp.ne.s32.totalorder %s493_s2, %s291_s13  ;;  %p295_p8 = scmp.lt.u32.totalorder %s291_s13, %s493_s2 }
  0x6f   :  { %p297_p9 = pnand %p295_p8, %p292_p7 }
  0x71   :  { %300 = shalt.err (!%p297_p9)
}
  0x72   :  { %199 = dma.vmem_to_hbm [thread:$0]  %s194_s8, 256, %s493_s2, [#allocation4], %s308_s20, %s308_s20, %s309_s21  }
  0x73   :  { %305 = dma.done.wait [#allocation4], 512  }
  0x74   :  { %306 = vsyncadd [#allocation4], 4294966784 }
  0x75   :  { %203 = vsyncpa [#allocation3], 1 }
  0x76   :  { %204 = vsyncpa [#allocation6], 1 }
  0x77   :  { %205 = vsyncpa [#allocation4], 1 }

</bundles_post_ra>
